<compile_context>
chip_gen: v6e
topology: v6e:2x2x1
jax: 0.10.0
libtpu: 0.0.40
codegen_flags: <defaults>
</compile_context>

<pallas_src>
import jax
import jax.numpy as jnp
from jax.experimental import pallas as pl
from jax.experimental.pallas import tpu as pltpu


# ----------------------------- hyper-parameters ------------------------------
B = 8                 # batch
INPUT_DIM = 64
HIDDEN_DIM = 64
EMBED_DIM = 32
CODEBOOK_SIZE = 128
N_LAYERS = 3
COMMITMENT_WEIGHT = 0.25
GUMBEL_T = 0.001      # unused by the deterministic quantizer (see TODO above)

_W = max(INPUT_DIM, HIDDEN_DIM, EMBED_DIM)   # padded square weight-pack width


def _full_spec(shape):
    # grid=(1,): whole array lives in one VMEM block.
    return pl.BlockSpec(shape, lambda i: (0,) * len(shape))


# ------------------------------ parameter packing ----------------------------
def pack_params(params):
    """Pack 10 parameter arrays into 4 HBM inputs (DMA-prologue reduction).

    Do this ONCE on the host; the packed dict is reused across calls.
    """
    ew1, eb1, ew2, eb2 = params["enc"]
    dw1, db1, dw2, db2 = params["dec"]
    cb = params["codebooks"]                               # (L, K, D)
    assert HIDDEN_DIM <= CODEBOOK_SIZE and INPUT_DIM <= CODEBOOK_SIZE
    assert EMBED_DIM <= CODEBOOK_SIZE and 4 + N_LAYERS <= 8

    # all four MLP weights, zero-padded into (4, _W, _W)
    w = jnp.zeros((4, _W, _W), jnp.float32)
    w = w.at[0, :INPUT_DIM, :HIDDEN_DIM].set(ew1)
    w = w.at[1, :HIDDEN_DIM, :EMBED_DIM].set(ew2)
    w = w.at[2, :EMBED_DIM, :HIDDEN_DIM].set(dw1)
    w = w.at[3, :HIDDEN_DIM, :INPUT_DIM].set(dw2)

    # biases + host-precomputed codebook squared norms in ONE (8, 128) tile
    small = jnp.zeros((8, CODEBOOK_SIZE), jnp.float32)
    small = small.at[0, :HIDDEN_DIM].set(eb1[0])
    small = small.at[1, :EMBED_DIM].set(eb2[0])
    small = small.at[2, :HIDDEN_DIM].set(db1[0])
    small = small.at[3, :INPUT_DIM].set(db2[0])
    small = small.at[4:4 + N_LAYERS, :].set(jnp.sum(cb * cb, axis=-1))  # (L, K)

    cb_dk = jnp.transpose(cb, (0, 2, 1))                   # (L, D, K) lane-dense
    return {"w": w, "small": small, "cb_kd": cb, "cb_dk": cb_dk}


# --------------------------- fused forward kernel ----------------------------
def make_fused_kernel(n_layers, commitment_weight, codebook_size,
                      input_dim, hidden_dim, embed_dim):
    def kernel(x_ref, w_ref, small_ref, cbkd_ref, cbdk_ref, o_ref):
        x = x_ref[...]                                               # (B, Din)

        # ---- encoder MLP: relu(x @ W1 + b1) @ W2 + b2 ----
        w0 = w_ref[0][:input_dim, :hidden_dim]
        w1 = w_ref[1][:hidden_dim, :embed_dim]
        h = jnp.maximum(
            jnp.dot(x, w0, preferred_element_type=jnp.float32)
            + small_ref[0:1, :hidden_dim], 0.0)
        res = (jnp.dot(h, w1, preferred_element_type=jnp.float32)
               + small_ref[1:2, :embed_dim])                         # (B, D)

        # ---- residual quantization over n_layers codebooks ----
        emb_sum = jnp.zeros_like(res)                                # (B, D)
        rq_acc = jnp.zeros((res.shape[0], 1), jnp.float32)           # (B, 1)
        for l in range(n_layers):
            cb_dk = cbdk_ref[l]                  # (D, K) lane-dense, no relayout
            cb_kd = cbkd_ref[l]                  # (K, D) for embedding gather
            cb_sq = small_ref[4 + l:5 + l, :]    # (1, K) host-precomputed norms

            # argmin_K ||res - cb||^2; the per-row ||res||^2 term is constant
            # across K so it is dropped: score = ||cb||^2 - 2 <res, cb>.
            score = cb_sq - 2.0 * jnp.dot(res, cb_dk,
                                          preferred_element_type=jnp.float32)
            idx = jax.lax.broadcasted_iota(jnp.int32, score.shape, 1)
            smin = jnp.min(score, axis=-1, keepdims=True)
            # first index attaining the minimum (== torch argmin tie-break);
            # exact f32 equality is safe: smin is an element of score.
            ids = jnp.min(jnp.where(score == smin, idx, codebook_size),
                          axis=-1, keepdims=True)                    # (B, 1)
            onehot = (idx == ids).astype(jnp.float32)                # (B, K)
            emb = jnp.dot(onehot, cb_kd,
                          preferred_element_type=jnp.float32)        # (B, D)

            diff = res - emb
            # rq-vae loss: emb_loss + cw * query_loss; with no gradients the
            # detach() calls are irrelevant -> (1 + cw) * ||r - e||^2.
            rq_acc = rq_acc + jnp.sum(diff * diff, axis=-1, keepdims=True)
            emb_sum = emb_sum + emb
            res = diff                                               # next residual

        # ---- decoder MLP on the summed embeddings ----
        w2 = w_ref[2][:embed_dim, :hidden_dim]
        w3 = w_ref[3][:hidden_dim, :input_dim]
        hd = jnp.maximum(
            jnp.dot(emb_sum, w2, preferred_element_type=jnp.float32)
            + small_ref[2:3, :hidden_dim], 0.0)
        x_hat = (jnp.dot(hd, w3, preferred_element_type=jnp.float32)
                 + small_ref[3:4, :input_dim])                       # (B, Din)

        # ---- losses ----
        rerr = x_hat - x
        recon = jnp.sum(rerr * rerr, axis=-1, keepdims=True)         # (B, 1)
        total = recon + (1.0 + commitment_weight) * rq_acc           # (B, 1)
        # TODO(synk): a (1,1) SMEM scalar output would also skip the masked
        # 1-lane VMEM store + writeback DMA; kept in VMEM for lowering safety.
        o_ref[...] = jnp.mean(total, axis=0, keepdims=True)          # (1, 1)

    return kernel


def rqvae_forward(x, packed, gumbel_t=GUMBEL_T):
    del gumbel_t  # deterministic nearest-neighbor quantization (t -> 0 limit)
    args = (x, packed["w"], packed["small"], packed["cb_kd"], packed["cb_dk"])
    out = pl.pallas_call(
        make_fused_kernel(N_LAYERS, COMMITMENT_WEIGHT, CODEBOOK_SIZE,
                          INPUT_DIM, HIDDEN_DIM, EMBED_DIM),
        out_shape=jax.ShapeDtypeStruct((1, 1), jnp.float32),
        grid=(1,),
        in_specs=[_full_spec(a.shape) for a in args],
        out_specs=_full_spec((1, 1)),
        compiler_params=pltpu.CompilerParams(
            dimension_semantics=("arbitrary",)),
    )(*args)
    return out[0, 0]


# ------------------------------ parameter init --------------------------------
def init_params(key):
    ks = jax.random.split(key, 9)
    s = 0.1
    params = {
        "enc": (s * jax.random.normal(ks[0], (INPUT_DIM, HIDDEN_DIM), jnp.float32),
                s * jax.random.normal(ks[1], (1, HIDDEN_DIM), jnp.float32),
                s * jax.random.normal(ks[2], (HIDDEN_DIM, EMBED_DIM), jnp.float32),
                s * jax.random.normal(ks[3], (1, EMBED_DIM), jnp.float32)),
        "dec": (s * jax.random.normal(ks[4], (EMBED_DIM, HIDDEN_DIM), jnp.float32),
                s * jax.random.normal(ks[5], (1, HIDDEN_DIM), jnp.float32),
                s * jax.random.normal(ks[6], (HIDDEN_DIM, INPUT_DIM), jnp.float32),
                s * jax.random.normal(ks[7], (1, INPUT_DIM), jnp.float32)),
        "codebooks": jax.random.normal(
            ks[8], (N_LAYERS, CODEBOOK_SIZE, EMBED_DIM), jnp.float32),
    }
    return params


# ------------------------------ pure-JAX reference ---------------------------
def reference_loss(x, params):
    def mlp(z, w1, b1, w2, b2):
        return jnp.maximum(z @ w1 + b1, 0.0) @ w2 + b2
    res = mlp(x, *params["enc"])
    embs, resids = [], []
    for l in range(N_LAYERS):
        cb = params["codebooks"][l]
        resids.append(res)
        d = ((res ** 2).sum(-1, keepdims=True) - 2.0 * res @ cb.T
             + (cb ** 2).sum(-1)[None, :])
        ids = jnp.argmin(d, axis=-1)
        emb = cb[ids]
        embs.append(emb)
        res = res - emb
    embs = jnp.stack(embs, 0)
    resids = jnp.stack(resids, 0)
    x_hat = mlp(embs.sum(0), *params["dec"])
    recon = ((x_hat - x) ** 2).sum(-1)
    rq = (1.0 + COMMITMENT_WEIGHT) * ((resids - embs) ** 2).sum(axis=(0, 2))
    return (recon + rq).mean()


if __name__ == "__main__":
    key = jax.random.PRNGKey(0)
    k_params, k_x = jax.random.split(key)
    params = init_params(k_params)
    packed = pack_params(params)          # one-time host-side packing
    x = jax.random.normal(k_x, (B, INPUT_DIM), jnp.float32)

    loss = rqvae_forward(x, packed, gumbel_t=GUMBEL_T)
    loss = jax.block_until_ready(loss)

    ref = reference_loss(x, params)
    assert jnp.allclose(loss, ref, rtol=1e-3, atol=1e-3), (loss, ref)

    print("KERNEL_OK")
</pallas_src>

<mosaic_0001>
module attributes {stable_mosaic.version = 11 : i64} {
  func.func @kernel(%arg0: i32, %arg1: memref<8x64xf32, #tpu.memory_space<vmem>>, %arg2: memref<4x64x64xf32, #tpu.memory_space<vmem>>, %arg3: memref<8x128xf32, #tpu.memory_space<vmem>>, %arg4: memref<3x128x32xf32, #tpu.memory_space<vmem>>, %arg5: memref<3x32x128xf32, #tpu.memory_space<vmem>>, %arg6: memref<1x1xf32, #tpu.memory_space<vmem>>) attributes {dimension_semantics = [#tpu.dimension_semantics<arbitrary>], iteration_bounds = array<i64: 1>, scalar_prefetch = 0 : i64, scratch_operands = 0 : i64, tpu.core_type = #tpu.core_type<tc>, window_params = [{pipeline_mode = #tpu.pipeline_mode<synchronous>, transform_indices = @transform_0, window_bounds = array<i64: 8, 64>}, {pipeline_mode = #tpu.pipeline_mode<synchronous>, transform_indices = @transform_1, window_bounds = array<i64: 4, 64, 64>}, {pipeline_mode = #tpu.pipeline_mode<synchronous>, transform_indices = @transform_2, window_bounds = array<i64: 8, 128>}, {pipeline_mode = #tpu.pipeline_mode<synchronous>, transform_indices = @transform_3, window_bounds = array<i64: 3, 128, 32>}, {pipeline_mode = #tpu.pipeline_mode<synchronous>, transform_indices = @transform_4, window_bounds = array<i64: 3, 32, 128>}, {pipeline_mode = #tpu.pipeline_mode<synchronous>, transform_indices = @transform_5, window_bounds = array<i64: 1, 1>}]} {
    %c0 = arith.constant 0 : index
    %c0_0 = arith.constant 0 : index
    %0 = vector.load %arg1[%c0, %c0_0] : memref<8x64xf32, #tpu.memory_space<vmem>>, vector<8x64xf32>
    %c0_1 = arith.constant 0 : index
    %c0_2 = arith.constant 0 : index
    %c0_3 = arith.constant 0 : index
    %1 = vector.load %arg2[%c0_1, %c0_2, %c0_3] : memref<4x64x64xf32, #tpu.memory_space<vmem>>, vector<1x64x64xf32>
    %2 = vector.shape_cast %1 : vector<1x64x64xf32> to vector<64x64xf32>
    %c1 = arith.constant 1 : index
    %c0_4 = arith.constant 0 : index
    %c0_5 = arith.constant 0 : index
    %3 = vector.load %arg2[%c1, %c0_4, %c0_5] : memref<4x64x64xf32, #tpu.memory_space<vmem>>, vector<1x64x64xf32>
    %4 = vector.shape_cast %3 : vector<1x64x64xf32> to vector<64x64xf32>
    %5 = vector.extract_strided_slice %4 {offsets = [0, 0], sizes = [64, 32], strides = [1, 1]} : vector<64x64xf32> to vector<64x32xf32>
    %cst = arith.constant dense<0.000000e+00> : vector<8x64xf32>
    %6 = tpu.matmul %0, %2, %cst {dimension_numbers = #tpu.dot_dimension_numbers<[1], [0], [0], [1], [0, 0, 1, 1], [], []>} : vector<8x64xf32>, vector<64x64xf32>, vector<8x64xf32> -> vector<8x64xf32>
    %c0_6 = arith.constant 0 : index
    %c0_7 = arith.constant 0 : index
    %7 = vector.load %arg3[%c0_6, %c0_7] : memref<8x128xf32, #tpu.memory_space<vmem>>, vector<1x64xf32>
    %8 = vector.broadcast %7 : vector<1x64xf32> to vector<8x64xf32>
    %9 = arith.addf %6, %8 : vector<8x64xf32>
    %cst_8 = arith.constant 0.000000e+00 : f32
    %10 = vector.broadcast %cst_8 : f32 to vector<8x64xf32>
    %11 = arith.maximumf %9, %10 : vector<8x64xf32>
    %cst_9 = arith.constant dense<0.000000e+00> : vector<8x32xf32>
    %12 = tpu.matmul %11, %5, %cst_9 {dimension_numbers = #tpu.dot_dimension_numbers<[1], [0], [0], [1], [0, 0, 1, 1], [], []>} : vector<8x64xf32>, vector<64x32xf32>, vector<8x32xf32> -> vector<8x32xf32>
    %c1_10 = arith.constant 1 : index
    %c0_11 = arith.constant 0 : index
    %13 = vector.load %arg3[%c1_10, %c0_11] : memref<8x128xf32, #tpu.memory_space<vmem>>, vector<1x32xf32>
    %14 = vector.broadcast %13 : vector<1x32xf32> to vector<8x32xf32>
    %15 = arith.addf %12, %14 : vector<8x32xf32>
    %cst_12 = arith.constant 0.000000e+00 : f32
    %16 = vector.broadcast %cst_12 : f32 to vector<8x32xf32>
    %cst_13 = arith.constant 0.000000e+00 : f32
    %17 = vector.broadcast %cst_13 : f32 to vector<8x1xf32>
    %c0_14 = arith.constant 0 : index
    %c0_15 = arith.constant 0 : index
    %c0_16 = arith.constant 0 : index
    %18 = vector.load %arg5[%c0_14, %c0_15, %c0_16] : memref<3x32x128xf32, #tpu.memory_space<vmem>>, vector<1x32x128xf32>
    %19 = vector.shape_cast %18 : vector<1x32x128xf32> to vector<32x128xf32>
    %c0_17 = arith.constant 0 : index
    %c0_18 = arith.constant 0 : index
    %c0_19 = arith.constant 0 : index
    %20 = vector.load %arg4[%c0_17, %c0_18, %c0_19] : memref<3x128x32xf32, #tpu.memory_space<vmem>>, vector<1x128x32xf32>
    %21 = vector.shape_cast %20 : vector<1x128x32xf32> to vector<128x32xf32>
    %c4 = arith.constant 4 : index
    %c0_20 = arith.constant 0 : index
    %22 = vector.load %arg3[%c4, %c0_20] : memref<8x128xf32, #tpu.memory_space<vmem>>, vector<1x128xf32>
    %cst_21 = arith.constant dense<0.000000e+00> : vector<8x128xf32>
    %23 = tpu.matmul %15, %19, %cst_21 {dimension_numbers = #tpu.dot_dimension_numbers<[1], [0], [0], [1], [0, 0, 1, 1], [], []>} : vector<8x32xf32>, vector<32x128xf32>, vector<8x128xf32> -> vector<8x128xf32>
    %cst_22 = arith.constant 2.000000e+00 : f32
    %24 = vector.broadcast %cst_22 : f32 to vector<8x128xf32>
    %25 = arith.mulf %24, %23 : vector<8x128xf32>
    %26 = vector.broadcast %22 : vector<1x128xf32> to vector<8x128xf32>
    %27 = arith.subf %26, %25 : vector<8x128xf32>
    %28 = tpu.iota {dimensions = array<i32: 1>} : vector<8x128xi32>
    %cst_23 = arith.constant dense<0x7F800000> : vector<8xf32>
    %29 = vector.multi_reduction <minimumf>, %27, %cst_23 [1] : vector<8x128xf32> to vector<8xf32>
    %30 = vector.shape_cast %29 : vector<8xf32> to vector<8x1xf32>
    %31 = vector.broadcast %30 : vector<8x1xf32> to vector<8x128xf32>
    %32 = arith.cmpf oeq, %27, %31 : vector<8x128xf32>
    %c128_i32 = arith.constant 128 : i32
    %33 = vector.broadcast %c128_i32 : i32 to vector<8x128xi32>
    %34 = arith.select %32, %28, %33 : vector<8x128xi1>, vector<8x128xi32>
    %cst_24 = arith.constant dense<2147483647> : vector<8xi32>
    %35 = vector.multi_reduction <minsi>, %34, %cst_24 [1] : vector<8x128xi32> to vector<8xi32>
    %36 = vector.shape_cast %35 : vector<8xi32> to vector<8x1xi32>
    %37 = vector.broadcast %36 : vector<8x1xi32> to vector<8x128xi32>
    %38 = arith.cmpi eq, %28, %37 : vector<8x128xi32>
    %39 = arith.extui %38 : vector<8x128xi1> to vector<8x128xi32>
    %40 = arith.sitofp %39 : vector<8x128xi32> to vector<8x128xf32>
    %cst_25 = arith.constant dense<0.000000e+00> : vector<8x32xf32>
    %41 = tpu.matmul %40, %21, %cst_25 {dimension_numbers = #tpu.dot_dimension_numbers<[1], [0], [0], [1], [0, 0, 1, 1], [], []>} : vector<8x128xf32>, vector<128x32xf32>, vector<8x32xf32> -> vector<8x32xf32>
    %42 = arith.subf %15, %41 : vector<8x32xf32>
    %43 = arith.mulf %42, %42 : vector<8x32xf32>
    %cst_26 = arith.constant dense<0.000000e+00> : vector<8xf32>
    %44 = vector.multi_reduction <add>, %43, %cst_26 [1] : vector<8x32xf32> to vector<8xf32>
    %45 = vector.shape_cast %44 : vector<8xf32> to vector<8x1xf32>
    %46 = arith.addf %17, %45 : vector<8x1xf32>
    %47 = arith.addf %16, %41 : vector<8x32xf32>
    %c1_27 = arith.constant 1 : index
    %c0_28 = arith.constant 0 : index
    %c0_29 = arith.constant 0 : index
    %48 = vector.load %arg5[%c1_27, %c0_28, %c0_29] : memref<3x32x128xf32, #tpu.memory_space<vmem>>, vector<1x32x128xf32>
    %49 = vector.shape_cast %48 : vector<1x32x128xf32> to vector<32x128xf32>
    %c1_30 = arith.constant 1 : index
    %c0_31 = arith.constant 0 : index
    %c0_32 = arith.constant 0 : index
    %50 = vector.load %arg4[%c1_30, %c0_31, %c0_32] : memref<3x128x32xf32, #tpu.memory_space<vmem>>, vector<1x128x32xf32>
    %51 = vector.shape_cast %50 : vector<1x128x32xf32> to vector<128x32xf32>
    %c5 = arith.constant 5 : index
    %c0_33 = arith.constant 0 : index
    %52 = vector.load %arg3[%c5, %c0_33] : memref<8x128xf32, #tpu.memory_space<vmem>>, vector<1x128xf32>
    %cst_34 = arith.constant dense<0.000000e+00> : vector<8x128xf32>
    %53 = tpu.matmul %42, %49, %cst_34 {dimension_numbers = #tpu.dot_dimension_numbers<[1], [0], [0], [1], [0, 0, 1, 1], [], []>} : vector<8x32xf32>, vector<32x128xf32>, vector<8x128xf32> -> vector<8x128xf32>
    %cst_35 = arith.constant 2.000000e+00 : f32
    %54 = vector.broadcast %cst_35 : f32 to vector<8x128xf32>
    %55 = arith.mulf %54, %53 : vector<8x128xf32>
    %56 = vector.broadcast %52 : vector<1x128xf32> to vector<8x128xf32>
    %57 = arith.subf %56, %55 : vector<8x128xf32>
    %58 = tpu.iota {dimensions = array<i32: 1>} : vector<8x128xi32>
    %cst_36 = arith.constant dense<0x7F800000> : vector<8xf32>
    %59 = vector.multi_reduction <minimumf>, %57, %cst_36 [1] : vector<8x128xf32> to vector<8xf32>
    %60 = vector.shape_cast %59 : vector<8xf32> to vector<8x1xf32>
    %61 = vector.broadcast %60 : vector<8x1xf32> to vector<8x128xf32>
    %62 = arith.cmpf oeq, %57, %61 : vector<8x128xf32>
    %c128_i32_37 = arith.constant 128 : i32
    %63 = vector.broadcast %c128_i32_37 : i32 to vector<8x128xi32>
    %64 = arith.select %62, %58, %63 : vector<8x128xi1>, vector<8x128xi32>
    %cst_38 = arith.constant dense<2147483647> : vector<8xi32>
    %65 = vector.multi_reduction <minsi>, %64, %cst_38 [1] : vector<8x128xi32> to vector<8xi32>
    %66 = vector.shape_cast %65 : vector<8xi32> to vector<8x1xi32>
    %67 = vector.broadcast %66 : vector<8x1xi32> to vector<8x128xi32>
    %68 = arith.cmpi eq, %58, %67 : vector<8x128xi32>
    %69 = arith.extui %68 : vector<8x128xi1> to vector<8x128xi32>
    %70 = arith.sitofp %69 : vector<8x128xi32> to vector<8x128xf32>
    %cst_39 = arith.constant dense<0.000000e+00> : vector<8x32xf32>
    %71 = tpu.matmul %70, %51, %cst_39 {dimension_numbers = #tpu.dot_dimension_numbers<[1], [0], [0], [1], [0, 0, 1, 1], [], []>} : vector<8x128xf32>, vector<128x32xf32>, vector<8x32xf32> -> vector<8x32xf32>
    %72 = arith.subf %42, %71 : vector<8x32xf32>
    %73 = arith.mulf %72, %72 : vector<8x32xf32>
    %cst_40 = arith.constant dense<0.000000e+00> : vector<8xf32>
    %74 = vector.multi_reduction <add>, %73, %cst_40 [1] : vector<8x32xf32> to vector<8xf32>
    %75 = vector.shape_cast %74 : vector<8xf32> to vector<8x1xf32>
    %76 = arith.addf %46, %75 : vector<8x1xf32>
    %77 = arith.addf %47, %71 : vector<8x32xf32>
    %c2 = arith.constant 2 : index
    %c0_41 = arith.constant 0 : index
    %c0_42 = arith.constant 0 : index
    %78 = vector.load %arg5[%c2, %c0_41, %c0_42] : memref<3x32x128xf32, #tpu.memory_space<vmem>>, vector<1x32x128xf32>
    %79 = vector.shape_cast %78 : vector<1x32x128xf32> to vector<32x128xf32>
    %c2_43 = arith.constant 2 : index
    %c0_44 = arith.constant 0 : index
    %c0_45 = arith.constant 0 : index
    %80 = vector.load %arg4[%c2_43, %c0_44, %c0_45] : memref<3x128x32xf32, #tpu.memory_space<vmem>>, vector<1x128x32xf32>
    %81 = vector.shape_cast %80 : vector<1x128x32xf32> to vector<128x32xf32>
    %c6 = arith.constant 6 : index
    %c0_46 = arith.constant 0 : index
    %82 = vector.load %arg3[%c6, %c0_46] : memref<8x128xf32, #tpu.memory_space<vmem>>, vector<1x128xf32>
    %cst_47 = arith.constant dense<0.000000e+00> : vector<8x128xf32>
    %83 = tpu.matmul %72, %79, %cst_47 {dimension_numbers = #tpu.dot_dimension_numbers<[1], [0], [0], [1], [0, 0, 1, 1], [], []>} : vector<8x32xf32>, vector<32x128xf32>, vector<8x128xf32> -> vector<8x128xf32>
    %cst_48 = arith.constant 2.000000e+00 : f32
    %84 = vector.broadcast %cst_48 : f32 to vector<8x128xf32>
    %85 = arith.mulf %84, %83 : vector<8x128xf32>
    %86 = vector.broadcast %82 : vector<1x128xf32> to vector<8x128xf32>
    %87 = arith.subf %86, %85 : vector<8x128xf32>
    %88 = tpu.iota {dimensions = array<i32: 1>} : vector<8x128xi32>
    %cst_49 = arith.constant dense<0x7F800000> : vector<8xf32>
    %89 = vector.multi_reduction <minimumf>, %87, %cst_49 [1] : vector<8x128xf32> to vector<8xf32>
    %90 = vector.shape_cast %89 : vector<8xf32> to vector<8x1xf32>
    %91 = vector.broadcast %90 : vector<8x1xf32> to vector<8x128xf32>
    %92 = arith.cmpf oeq, %87, %91 : vector<8x128xf32>
    %c128_i32_50 = arith.constant 128 : i32
    %93 = vector.broadcast %c128_i32_50 : i32 to vector<8x128xi32>
    %94 = arith.select %92, %88, %93 : vector<8x128xi1>, vector<8x128xi32>
    %cst_51 = arith.constant dense<2147483647> : vector<8xi32>
    %95 = vector.multi_reduction <minsi>, %94, %cst_51 [1] : vector<8x128xi32> to vector<8xi32>
    %96 = vector.shape_cast %95 : vector<8xi32> to vector<8x1xi32>
    %97 = vector.broadcast %96 : vector<8x1xi32> to vector<8x128xi32>
    %98 = arith.cmpi eq, %88, %97 : vector<8x128xi32>
    %99 = arith.extui %98 : vector<8x128xi1> to vector<8x128xi32>
    %100 = arith.sitofp %99 : vector<8x128xi32> to vector<8x128xf32>
    %cst_52 = arith.constant dense<0.000000e+00> : vector<8x32xf32>
    %101 = tpu.matmul %100, %81, %cst_52 {dimension_numbers = #tpu.dot_dimension_numbers<[1], [0], [0], [1], [0, 0, 1, 1], [], []>} : vector<8x128xf32>, vector<128x32xf32>, vector<8x32xf32> -> vector<8x32xf32>
    %102 = arith.subf %72, %101 : vector<8x32xf32>
    %103 = arith.mulf %102, %102 : vector<8x32xf32>
    %cst_53 = arith.constant dense<0.000000e+00> : vector<8xf32>
    %104 = vector.multi_reduction <add>, %103, %cst_53 [1] : vector<8x32xf32> to vector<8xf32>
    %105 = vector.shape_cast %104 : vector<8xf32> to vector<8x1xf32>
    %106 = arith.addf %76, %105 : vector<8x1xf32>
    %107 = arith.addf %77, %101 : vector<8x32xf32>
    %c2_54 = arith.constant 2 : index
    %c0_55 = arith.constant 0 : index
    %c0_56 = arith.constant 0 : index
    %108 = vector.load %arg2[%c2_54, %c0_55, %c0_56] : memref<4x64x64xf32, #tpu.memory_space<vmem>>, vector<1x64x64xf32>
    %109 = vector.shape_cast %108 : vector<1x64x64xf32> to vector<64x64xf32>
    %110 = vector.extract_strided_slice %109 {offsets = [0, 0], sizes = [32, 64], strides = [1, 1]} : vector<64x64xf32> to vector<32x64xf32>
    %c3 = arith.constant 3 : index
    %c0_57 = arith.constant 0 : index
    %c0_58 = arith.constant 0 : index
    %111 = vector.load %arg2[%c3, %c0_57, %c0_58] : memref<4x64x64xf32, #tpu.memory_space<vmem>>, vector<1x64x64xf32>
    %112 = vector.shape_cast %111 : vector<1x64x64xf32> to vector<64x64xf32>
    %cst_59 = arith.constant dense<0.000000e+00> : vector<8x64xf32>
    %113 = tpu.matmul %107, %110, %cst_59 {dimension_numbers = #tpu.dot_dimension_numbers<[1], [0], [0], [1], [0, 0, 1, 1], [], []>} : vector<8x32xf32>, vector<32x64xf32>, vector<8x64xf32> -> vector<8x64xf32>
    %c2_60 = arith.constant 2 : index
    %c0_61 = arith.constant 0 : index
    %114 = vector.load %arg3[%c2_60, %c0_61] : memref<8x128xf32, #tpu.memory_space<vmem>>, vector<1x64xf32>
    %115 = vector.broadcast %114 : vector<1x64xf32> to vector<8x64xf32>
    %116 = arith.addf %113, %115 : vector<8x64xf32>
    %cst_62 = arith.constant 0.000000e+00 : f32
    %117 = vector.broadcast %cst_62 : f32 to vector<8x64xf32>
    %118 = arith.maximumf %116, %117 : vector<8x64xf32>
    %cst_63 = arith.constant dense<0.000000e+00> : vector<8x64xf32>
    %119 = tpu.matmul %118, %112, %cst_63 {dimension_numbers = #tpu.dot_dimension_numbers<[1], [0], [0], [1], [0, 0, 1, 1], [], []>} : vector<8x64xf32>, vector<64x64xf32>, vector<8x64xf32> -> vector<8x64xf32>
    %c3_64 = arith.constant 3 : index
    %c0_65 = arith.constant 0 : index
    %120 = vector.load %arg3[%c3_64, %c0_65] : memref<8x128xf32, #tpu.memory_space<vmem>>, vector<1x64xf32>
    %121 = vector.broadcast %120 : vector<1x64xf32> to vector<8x64xf32>
    %122 = arith.addf %119, %121 : vector<8x64xf32>
    %123 = arith.subf %122, %0 : vector<8x64xf32>
    %124 = arith.mulf %123, %123 : vector<8x64xf32>
    %cst_66 = arith.constant dense<0.000000e+00> : vector<8xf32>
    %125 = vector.multi_reduction <add>, %124, %cst_66 [1] : vector<8x64xf32> to vector<8xf32>
    %126 = vector.shape_cast %125 : vector<8xf32> to vector<8x1xf32>
    %cst_67 = arith.constant 1.250000e+00 : f32
    %127 = vector.broadcast %cst_67 : f32 to vector<8x1xf32>
    %128 = arith.mulf %127, %106 : vector<8x1xf32>
    %129 = arith.addf %126, %128 : vector<8x1xf32>
    %cst_68 = arith.constant dense<0.000000e+00> : vector<1xf32>
    %130 = vector.multi_reduction <add>, %129, %cst_68 [0] : vector<8x1xf32> to vector<1xf32>
    %131 = vector.shape_cast %130 : vector<1xf32> to vector<1x1xf32>
    %cst_69 = arith.constant 8.000000e+00 : f32
    %132 = vector.broadcast %cst_69 : f32 to vector<1x1xf32>
    %133 = arith.divf %131, %132 : vector<1x1xf32>
    %c0_70 = arith.constant 0 : index
    %c0_71 = arith.constant 0 : index
    %134 = vector.load %arg6[%c0_70, %c0_71] : memref<1x1xf32, #tpu.memory_space<vmem>>, vector<1x1xf32>
    tpu.vector_store %arg6[%c0_70, %c0_71], %133 {strides = array<i32>} : memref<1x1xf32, #tpu.memory_space<vmem>>, vector<1x1xf32>,
    return
  }
  func.func @transform_0(%arg0: i32) -> (i32, i32) {
    %c0_i32 = arith.constant 0 : i32
    %c0_i32_0 = arith.constant 0 : i32
    %c0_i32_1 = arith.constant 0 : i32
    return %c0_i32, %c0_i32_0 : i32, i32
  }
  func.func @transform_1(%arg0: i32) -> (i32, i32, i32) {
    %c0_i32 = arith.constant 0 : i32
    %c0_i32_0 = arith.constant 0 : i32
    %c0_i32_1 = arith.constant 0 : i32
    %c0_i32_2 = arith.constant 0 : i32
    return %c0_i32, %c0_i32_0, %c0_i32_1 : i32, i32, i32
  }
  func.func @transform_2(%arg0: i32) -> (i32, i32) {
    %c0_i32 = arith.constant 0 : i32
    %c0_i32_0 = arith.constant 0 : i32
    %c0_i32_1 = arith.constant 0 : i32
    return %c0_i32, %c0_i32_0 : i32, i32
  }
  func.func @transform_3(%arg0: i32) -> (i32, i32, i32) {
    %c0_i32 = arith.constant 0 : i32
    %c0_i32_0 = arith.constant 0 : i32
    %c0_i32_1 = arith.constant 0 : i32
    %c0_i32_2 = arith.constant 0 : i32
    return %c0_i32, %c0_i32_0, %c0_i32_1 : i32, i32, i32
  }
  func.func @transform_4(%arg0: i32) -> (i32, i32, i32) {
    %c0_i32 = arith.constant 0 : i32
    %c0_i32_0 = arith.constant 0 : i32
    %c0_i32_1 = arith.constant 0 : i32
    %c0_i32_2 = arith.constant 0 : i32
    return %c0_i32, %c0_i32_0, %c0_i32_1 : i32, i32, i32
  }
  func.func @transform_5(%arg0: i32) -> (i32, i32) {
    %c0_i32 = arith.constant 0 : i32
    %c0_i32_0 = arith.constant 0 : i32
    %c0_i32_1 = arith.constant 0 : i32
    return %c0_i32, %c0_i32_0 : i32, i32
  }
}

</mosaic_0001>

<bundles_post_ra>
// kernel: tpu_custom_call.1
= control target key start
LH: loop header
LB: loop body
LE: loop exit
PB: predicated region body
PF: predicated region fallthrough
CT: control target
= control target key end

     0   :  { %v1410_v1 = vmov 0.0   ;;  %vm1411_vm0 = vmmov 0   ;;  %s1893_s0 = inlined_call_operand.vmem [shape: f32[8,64], index: 0, kind: input, shape index: {}]   ;;  %s1894_s1 = inlined_call_operand.vmem [shape: f32[4,64,64], index: 1, kind: input, shape index: {}]   ;;  %s1895_s2 = inlined_call_operand.vmem [shape: f32[8,128], index: 2, kind: input, shape index: {}]   ;;  %s1896_s3 = inlined_call_operand.vmem [shape: f32[3,128,32], index: 3, kind: input, shape index: {}]   ;;  %s1897_s4 = inlined_call_operand.vmem [shape: f32[3,32,128], index: 4, kind: input, shape index: {}]   ;;  %s1898_s5 = inlined_call_operand.hbm [shape: f32[1,1], index: 5, kind: output, shape index: {}]  }
   0x1   :  { %v29_v0 = vld [vmem:[%s1894_s1 + $0x38] sm:$0xff]  ;;  %1178 = vmatprep.subr.mxu0 %v1410_v1  ;;  %v28_v2 = vld [vmem:[%s1894_s1 + $0x30] sm:$0xff]  ;;  %1194 = vmatprep.mubr.msk.f32.mxu0 %vm1411_vm0, %v1410_v1  ;;  %v27_v3 = vld [vmem:[%s1894_s1 + $0x28] sm:$0xff] }
   0x2   :  { %1179 = vmatpush3.msra.mxu0 %v29_v0  ;;  %1197 = vmatprep.subr.mxu1 %v1410_v1  ;;  %v1007_v4 = vld [vmem:[%s1894_s1 + $0x78] sm:$0xff]  ;;  %v1006_v5 = vld [vmem:[%s1894_s1 + $0x70] sm:$0xff]  ;;  %v26_v6 = vld [vmem:[%s1894_s1 + $0x20] sm:$0xff] }
   0x3   :  { %1180 = vmatprep.subr.mxu0 %v1410_v1  ;;  %1213 = vmatprep.mubr.msk.f32.mxu1 %vm1411_vm0, %v1410_v1  ;;  %v1005_v7 = vld [vmem:[%s1894_s1 + $0x68] sm:$0xff] }
   0x4   :  { %1181 = vmatpush3.msra.mxu0 %v28_v2  ;;  %1198 = vmatpush3.msra.mxu1 %v1007_v4 }
   0x5   :  { %1182 = vmatprep.subr.mxu0 %v1410_v1  ;;  %1199 = vmatprep.subr.mxu1 %v1410_v1 }
   0x6   :  { %10 = vsyncpa [#allocation3], 0  ;;  %1183 = vmatpush3.msra.mxu0 %v27_v3  ;;  %1200 = vmatpush3.msra.mxu1 %v1006_v5  ;;  %v25_v8 = vld [vmem:[%s1894_s1 + $0x18] sm:$0xff]  ;;  %v1004_v9 = vld [vmem:[%s1894_s1 + $0x60] sm:$0xff]  ;;  %vm44_vm1 = vcmask 523264   ;;  %vm218_vm2 = vcmask 261120   ;;  %v298_v36 = vlaneseq }
   0x7   :  { %1184 = vmatprep.subr.mxu0 %v1410_v1  ;;  %1201 = vmatprep.subr.mxu1 %v1410_v1  ;;  %v24_v10 = vld [vmem:[%s1894_s1 + $0x10] sm:$0xff]  ;;  %v1003_v11 = vld [vmem:[%s1894_s1 + $0x58] sm:$0xff]  ;;  %v23_v12 = vld [vmem:[%s1894_s1 + $0x8] sm:$0xff]  ;;  %vm984_vm12 = vcmask 0  }
   0x8   :  { %1185 = vmatpush3.msra.mxu0 %v26_v6  ;;  %1202 = vmatpush3.msra.mxu1 %v1005_v7  ;;  %v22_v13 = vld [vmem:[%s1894_s1] sm:$0xff]  ;;  %v1002_v15 = vld [vmem:[%s1894_s1 + $0x50] sm:$0xff]  ;;  %v1001_v16 = vld [vmem:[%s1894_s1 + $0x48] sm:$0xff]  ;;  %v1557_v37 = vand.u32 127, %v298_v36  ;;  %v1412_v6 = vmov 1.0  }
   0x9   :  { %1186 = vmatprep.subr.mxu0 %v1410_v1  ;;  %1203 = vmatprep.subr.mxu1 %v1410_v1  ;;  %v1503_v14 = vld [vmem:[%s1893_s0] sm:$0xff]  ;;  %v200_v18 = vld [vmem:[%s1897_s4 + $0x18] sm:$0xff]  ;;  %v199_v19 = vld [vmem:[%s1897_s4 + $0x10] sm:$0xff] }
   0xa   :  { %1187 = vmatpush3.msra.mxu0 %v25_v8  ;;  %1204 = vmatpush3.msra.mxu1 %v1004_v9  ;;  %v1000_v17 = vld [vmem:[%s1894_s1 + $0x40] sm:$0xff]  ;;  %v198_v25 = vld [vmem:[%s1897_s4 + $0x8] sm:$0xff]  ;;  %v216_v42 = vld [vmem:[%s1896_s3 + $0x78] sm:$0xff] }
   0xb   :  { %1188 = vmatprep.subr.mxu0 %v1410_v1  ;;  %1205 = vmatprep.subr.mxu1 %v1410_v1  ;;  %v1008_v20 = vld [vmem:[%s1895_s2] ss:$0 sm:$0xff]  ;;  %v1010_v27 = vld [vmem:[%s1895_s2 + $0x1] ss:$0 sm:$0xff]  ;;  %v1013_v32 = vld [vmem:[%s1895_s2 + $0x4] ss:$0 sm:$0xff] }
   0xc   :  { %1189 = vmatpush3.msra.mxu0 %v24_v10  ;;  %1206 = vmatpush3.msra.mxu1 %v1003_v11  ;;  %v197_v26 = vld [vmem:[%s1897_s4] sm:$0xff]  ;;  %v215_v43 = vld [vmem:[%s1896_s3 + $0x70] sm:$0xff]  ;;  %v214_v44 = vld [vmem:[%s1896_s3 + $0x68] sm:$0xff] }
   0xd   :  { %1190 = vmatprep.subr.mxu0 %v1410_v1  ;;  %1207 = vmatprep.subr.mxu1 %v1410_v1  ;;  %v213_v45 = vld [vmem:[%s1896_s3 + $0x60] sm:$0xff]  ;;  %v212_v46 = vld [vmem:[%s1896_s3 + $0x58] sm:$0xff]  ;;  %v211_v47 = vld [vmem:[%s1896_s3 + $0x50] sm:$0xff] }
   0xe   :  { %1191 = vmatpush3.msra.mxu0 %v23_v12  ;;  %1208 = vmatpush3.msra.mxu1 %v1002_v15  ;;  %v210_v48 = vld [vmem:[%s1896_s3 + $0x48] sm:$0xff]  ;;  %v209_v49 = vld [vmem:[%s1896_s3 + $0x40] sm:$0xff]  ;;  %v208_v50 = vld [vmem:[%s1896_s3 + $0x38] sm:$0xff] }
   0xf   :  { %1192 = vmatprep.subr.mxu0 %v1410_v1  ;;  %1209 = vmatprep.subr.mxu1 %v1410_v1  ;;  %v207_v51 = vld [vmem:[%s1896_s3 + $0x30] sm:$0xff]  ;;  %v206_v52 = vld [vmem:[%s1896_s3 + $0x28] sm:$0xff]  ;;  %v205_v53 = vld [vmem:[%s1896_s3 + $0x20] sm:$0xff] }
  0x10   :  { %1193 = vmatpush3.msra.mxu0 %v22_v13  ;;  %1210 = vmatpush3.msra.mxu1 %v1001_v16  ;;  %v204_v54 = vld [vmem:[%s1896_s3 + $0x18] sm:$0xff]  ;;  %v203_v59 = vld [vmem:[%s1896_s3 + $0x10] sm:$0xff]  ;;  %v202_v60 = vld [vmem:[%s1896_s3 + $0x8] sm:$0xff] }
  0x11   :  { %1195 = vmatmul.mubr.msk.f32.vlgmr.msra.gmra.mxu0 %vm44_vm1, %v1503_v14  ;;  %1216 = vmatprep.subr.mxu0 %v1410_v1  ;;  %v201_v61 = vld [vmem:[%s1896_s3] sm:$0xff]  ;;  %v1019_v62 = vld [vmem:[%s1897_s4 + $0x38] sm:$0xff]  ;;  %v1018_v63 = vld [vmem:[%s1897_s4 + $0x30] sm:$0xff] }
  0x12   :  { %1224 = vmatprep.mubr.msk.f32.mxu0 %vm1411_vm0, %v1410_v1  ;;  %1211 = vmatprep.subr.mxu1 %v1410_v1  ;;  %v1017_v7 = vld [vmem:[%s1897_s4 + $0x28] sm:$0xff]  ;;  %v1016_v8 = vld [vmem:[%s1897_s4 + $0x20] sm:$0xff] }
  0x13   :  { %1212 = vmatpush3.msra.mxu1 %v1000_v17  ;;  %1217 = vmatpush3.msra.mxu0 %v200_v18  ;;  %v1037_v13 = vld [vmem:[%s1895_s2 + $0x5] ss:$0 sm:$0xff] }
  0x14   :  { %1227 = vmatprep.subr.mxu1 %v1410_v1  ;;  %1218 = vmatprep.subr.mxu0 %v1410_v1 }
  0x15   :  { %1219 = vmatpush3.msra.mxu0 %v199_v19 }
  0x16   :  { %1220 = vmatprep.subr.mxu0 %v1410_v1 }
  0x17   :  { %1221 = vmatpush3.msra.mxu0 %v198_v25  ;;  %v1032_v25 = vld [vmem:[%s1896_s3 + $0xe0] sm:$0xff] }
  0x18   :  { %1222 = vmatprep.subr.mxu0 %v1410_v1 }
  0x19   :  { %1223 = vmatpush3.msra.mxu0 %v197_v26  ;;  %v1031_v26 = vld [vmem:[%s1896_s3 + $0xd8] sm:$0xff] }
  0x1a   :  { %1262 = vmatprep.subr.mxu0 %v1410_v1 }
  0xd1   :  { %v114_v21 = vpop.f32.mrf.mxu0 }
  0xd2   :  { %v115_v22 = vadd.f32 %v1008_v20, %v114_v21 }
  0xd3   :  { %v1196_v23 = vpop.f32.mrf.mxu0 }
  0xd4   :  { %v118_v24 = vmax.f32 %v115_v22, 0.0  ;;  %v1035_v22 = vld [vmem:[%s1896_s3 + $0xf8] sm:$0xff]  ;;  %v1034_v23 = vld [vmem:[%s1896_s3 + $0xf0] sm:$0xff] }
  0xd6   :  { %1214 = vmatmul.mubr.msk.f32.vlgmr.msra.gmra.mxu1 %vm44_vm1, %v118_v24  ;;  %v1033_v24 = vld [vmem:[%s1896_s3 + $0xe8] sm:$0xff] }
  0xd7   :  { %1259 = vmatprep.mubr.msk.f32.mxu1 %vm1411_vm0, %v1410_v1  ;;  %1228 = vmatpush3.msra.mxu1 %v216_v42  ;;  %v1020_v42 = vld [vmem:[%s1896_s3 + $0x80] sm:$0xff] }
  0xd8   :  { %1229 = vmatprep.subr.mxu1 %v1410_v1 }
  0xd9   :  { %1230 = vmatpush3.msra.mxu1 %v215_v43  ;;  %v1043_v43 = vld [vmem:[%s1897_s4 + $0x58] sm:$0xff] }
  0xda   :  { %1231 = vmatprep.subr.mxu1 %v1410_v1 }
  0xdb   :  { %1232 = vmatpush3.msra.mxu1 %v214_v44  ;;  %v1042_v44 = vld [vmem:[%s1897_s4 + $0x50] sm:$0xff] }
  0xdc   :  { %1233 = vmatprep.subr.mxu1 %v1410_v1 }
  0xdd   :  { %1234 = vmatpush3.msra.mxu1 %v213_v45 }
  0xde   :  { %1235 = vmatprep.subr.mxu1 %v1410_v1 }
  0xdf   :  { %1236 = vmatpush3.msra.mxu1 %v212_v46 }
  0xe0   :  { %1237 = vmatprep.subr.mxu1 %v1410_v1 }
  0xe1   :  { %1238 = vmatpush3.msra.mxu1 %v211_v47 }
  0xe2   :  { %1239 = vmatprep.subr.mxu1 %v1410_v1 }
  0xe3   :  { %1240 = vmatpush3.msra.mxu1 %v210_v48 }
  0xe4   :  { %1241 = vmatprep.subr.mxu1 %v1410_v1 }
  0xe5   :  { %1242 = vmatpush3.msra.mxu1 %v209_v49 }
  0xe6   :  { %1243 = vmatprep.subr.mxu1 %v1410_v1 }
  0xe7   :  { %1244 = vmatpush3.msra.mxu1 %v208_v50  ;;  %v1041_v50 = vld [vmem:[%s1897_s4 + $0x48] sm:$0xff] }
  0xe8   :  { %1245 = vmatprep.subr.mxu1 %v1410_v1 }
  0xe9   :  { %1246 = vmatpush3.msra.mxu1 %v207_v51  ;;  %v1040_v51 = vld [vmem:[%s1897_s4 + $0x40] sm:$0xff] }
  0xea   :  { %1247 = vmatprep.subr.mxu1 %v1410_v1 }
  0xeb   :  { %1248 = vmatpush3.msra.mxu1 %v206_v52 }
  0xec   :  { %1249 = vmatprep.subr.mxu1 %v1410_v1 }
  0xed   :  { %1250 = vmatpush3.msra.mxu1 %v205_v53 }
  0xee   :  { %1251 = vmatprep.subr.mxu1 %v1410_v1 }
  0xef   :  { %1252 = vmatpush3.msra.mxu1 %v204_v54 }
  0xf0   :  { %1253 = vmatprep.subr.mxu1 %v1410_v1 }
  0xf1   :  { %1254 = vmatpush3.msra.mxu1 %v203_v59 }
  0xf2   :  { %1255 = vmatprep.subr.mxu1 %v1410_v1 }
  0xf3   :  { %1256 = vmatpush3.msra.mxu1 %v202_v60 }
  0xf4   :  { %1257 = vmatprep.subr.mxu1 %v1410_v1 }
  0xf5   :  { %1258 = vmatpush3.msra.mxu1 %v201_v61 }
  0xf6   :  { %1308 = vmatprep.subr.mxu1 %v1410_v1 }
 0x196   :  { %v193_v28 = vpop.f32.mrf.mxu1 }
 0x197   :  { %v1548_v29 = vadd.f32 %v1010_v27, %v193_v28  ;;  %v1030_v27 = vld [vmem:[%s1896_s3 + $0xd0] sm:$0xff]  ;;  %v1029_v28 = vld [vmem:[%s1896_s3 + $0xc8] sm:$0xff] }
 0x198   :  { %v1215_v30 = vpop.f32.mrf.mxu1 }
 0x199   :  { %1225 = vmatmul.mubr.msk.f32.vlgmr.msra.gmra.mxu0 %vm218_vm2, %v1548_v29  ;;  %v1027_v30 = vld [vmem:[%s1896_s3 + $0xb8] sm:$0xff] }
 0x19a   :  { %1270 = vmatprep.mubr.msk.f32.mxu0 %vm1411_vm0, %v1410_v1  ;;  %1263 = vmatpush3.msra.mxu0 %v1019_v62 }
 0x19b   :  { %1264 = vmatprep.subr.mxu0 %v1410_v1 }
 0x19c   :  { %1265 = vmatpush3.msra.mxu0 %v1018_v63 }
 0x19d   :  { %1266 = vmatprep.subr.mxu0 %v1410_v1 }
 0x19e   :  { %1267 = vmatpush3.msra.mxu0 %v1017_v7  ;;  %v1056_v7 = vld [vmem:[%s1896_s3 + $0x160] sm:$0xff] }
 0x19f   :  { %1268 = vmatprep.subr.mxu0 %v1410_v1 }
 0x1a0   :  { %1269 = vmatpush3.msra.mxu0 %v1016_v8  ;;  %v1055_v8 = vld [vmem:[%s1896_s3 + $0x158] sm:$0xff] }
 0x1a1   :  { %1273 = vmatprep.subr.mxu0 %v1410_v1 }
 0x259   :  { %v288_v31 = vpop.f32.mrf.mxu0 }
 0x25a   :  { %v292_v33 = vmul.f32 2.0, %v288_v31  ;;  %v1026_v31 = vld [vmem:[%s1896_s3 + $0xb0] sm:$0xff] }
 0x25b   :  { %v1226_v34 = vpop.f32.mrf.mxu0 }
 0x25c   :  { %v297_v35 = vsub.f32 %v1013_v32, %v292_v33  ;;  %v1025_v32 = vld [vmem:[%s1896_s3 + $0xa8] sm:$0xff]  ;;  %v1024_v33 = vld [vmem:[%s1896_s3 + $0xa0] sm:$0xff]  ;;  %v1023_v34 = vld [vmem:[%s1896_s3 + $0x98] sm:$0xff] }
 0x25e   :  { %300 = vmin.xlane.f32.xlu0 %v297_v35 }
 0x2e7   :  { %v301_v38 = vpop.xlane.xlu0 %300 }
 0x2e8   :  { %vm302_vm3 = vcmp.eq.f32.partialorder %v297_v35, %v301_v38 }
 0x2e9   :  { %v303_v39 = vsel %vm302_vm3, %v1557_v37, 128 }
 0x2ea   :  { %v305_v40 = vshra.s32 %v303_v39, 16  ;;  %v304_v55 = vand.u32 65535, %v303_v39 }
 0x2ec   :  { %v307_v41 = vcvt.s32.f32 %v305_v40  ;;  %v306_v57 = vcvt.s32.f32 %v304_v55  ;;  %v1022_v40 = vld [vmem:[%s1896_s3 + $0x90] sm:$0xff] }
 0x2ee   :  { %308 = vmin.xlane.f32.xlu0 %v307_v41 }
 0x377   :  { %v309_v56 = vpop.xlane.xlu0 %308 }
 0x378   :  { %vm310_vm4 = vcmp.eq.f32.partialorder %v307_v41, %v309_v56  ;;  %v315_v0 = vcvt.f32.s32 %v309_v56  ;;  %v1021_v41 = vld [vmem:[%s1896_s3 + $0x88] sm:$0xff]  ;;  %v1061_v56 = vld [vmem:[%s1895_s2 + $0x6] ss:$0 sm:$0xff] }
 0x379   :  { %v311_v58 = vsel %vm310_vm4, %v306_v57, inf }
 0x37a   :  { %312 = vmin.xlane.f32.xlu1 %v311_v58  ;;  %v316_v3 = vshll.u32 %v315_v0, 16 }
 0x403   :  { %v313_v2 = vpop.xlane.xlu1 %312 }
 0x404   :  { %v314_v4 = vcvt.f32.s32 %v313_v2 }
 0x406   :  { %v317_v5 = vadd.s32 %v316_v3, %v314_v4  ;;  %v1059_v3 = vld [vmem:[%s1896_s3 + $0x178] sm:$0xff]  ;;  %v1058_v4 = vld [vmem:[%s1896_s3 + $0x170] sm:$0xff] }
 0x408   :  { %vm318_vm5 = vcmp.eq.s32.totalorder %v1557_v37, %v317_v5  ;;  %v1057_v5 = vld [vmem:[%s1896_s3 + $0x168] sm:$0xff] }
 0x409   :  { %1260 = vmatmul.mubr.msk.f32.vlgmr.msra.gmra.mxu1 %vm318_vm5, %v1412_v6 }
 0x40a   :  { %1316 = vmatprep.mubr.msk.f32.mxu1 %vm1411_vm0, %v1410_v1  ;;  %1309 = vmatpush3.msra.mxu1 %v1043_v43  ;;  %v1075_v43 = vld [vmem:[%s1894_s1 + $0xf8] sm:$0xff] }
 0x40b   :  { %1310 = vmatprep.subr.mxu1 %v1410_v1 }
 0x40c   :  { %1311 = vmatpush3.msra.mxu1 %v1042_v44  ;;  %v1073_v44 = vld [vmem:[%s1894_s1 + $0xe8] sm:$0xff] }
 0x40d   :  { %1312 = vmatprep.subr.mxu1 %v1410_v1 }
 0x40e   :  { %1313 = vmatpush3.msra.mxu1 %v1041_v50  ;;  %v1076_v50 = vld [vmem:[%s1895_s2 + $0x2] ss:$0 sm:$0xff] }
 0x40f   :  { %1314 = vmatprep.subr.mxu1 %v1410_v1 }
 0x410   :  { %1315 = vmatpush3.msra.mxu1 %v1040_v51 }
 0x411   :  { %1319 = vmatprep.subr.mxu1 %v1410_v1 }
 0x4c9   :  { %v1644_v9 = vpop.f32.mrf.mxu1 }
 0x4ca   :  { %v1648_v10 = vsub.f32 %v1548_v29, %v1644_v9  ;;  %v1028_v29 = vld [vmem:[%s1896_s3 + $0xc0] sm:$0xff] }
 0x4cb   :  { %v1261_v11 = vpop.f32.mrf.mxu1 }
 0x4cc   :  { %1271 = vmatmul.mubr.msk.f32.vlgmr.msra.gmra.mxu0 %vm218_vm2, %v1648_v10  ;;  %v392_v0 = vmul.f32 %v1648_v10, %v1648_v10  ;;  %v1053_v11 = vld [vmem:[%s1896_s3 + $0x148] sm:$0xff] }
 0x4cd   :  { %1305 = vmatprep.mubr.msk.f32.mxu0 %vm1411_vm0, %v1410_v1  ;;  %1274 = vmatpush3.msra.mxu0 %v1035_v22 }
 0x4ce   :  { %1275 = vmatprep.subr.mxu0 %v1410_v1  ;;  %v393_v2 = vsel %vm218_vm2, %v392_v0, 0.0 }
 0x4cf   :  { %1276 = vmatpush3.msra.mxu0 %v1034_v23 }
 0x4d0   :  { %1277 = vmatprep.subr.mxu0 %v1410_v1 }
 0x4d1   :  { %1278 = vmatpush3.msra.mxu0 %v1033_v24 }
 0x4d2   :  { %1279 = vmatprep.subr.mxu0 %v1410_v1 }
 0x4d3   :  { %1280 = vmatpush3.msra.mxu0 %v1032_v25  ;;  %v1046_v25 = vld [vmem:[%s1896_s3 + $0x110] sm:$0xff] }
 0x4d4   :  { %1281 = vmatprep.subr.mxu0 %v1410_v1 }
 0x4d5   :  { %1282 = vmatpush3.msra.mxu0 %v1031_v26  ;;  %v1045_v26 = vld [vmem:[%s1896_s3 + $0x108] sm:$0xff] }
 0x4d6   :  { %1283 = vmatprep.subr.mxu0 %v1410_v1 }
 0x4d7   :  { %1284 = vmatpush3.msra.mxu0 %v1030_v27  ;;  %v1044_v27 = vld [vmem:[%s1896_s3 + $0x100] sm:$0xff] }
 0x4d8   :  { %1285 = vmatprep.subr.mxu0 %v1410_v1 }
 0x4d9   :  { %1286 = vmatpush3.msra.mxu0 %v1029_v28  ;;  %v1067_v28 = vld [vmem:[%s1894_s1 + $0x98] sm:$0xff] }
 0x4da   :  { %1287 = vmatprep.subr.mxu0 %v1410_v1 }
 0x4db   :  { %1288 = vmatpush3.msra.mxu0 %v1028_v29  ;;  %v1066_v29 = vld [vmem:[%s1894_s1 + $0x90] sm:$0xff] }
 0x4dc   :  { %1289 = vmatprep.subr.mxu0 %v1410_v1 }
 0x4dd   :  { %1290 = vmatpush3.msra.mxu0 %v1027_v30 }
 0x4de   :  { %1291 = vmatprep.subr.mxu0 %v1410_v1 }
 0x4df   :  { %1292 = vmatpush3.msra.mxu0 %v1026_v31 }
 0x4e0   :  { %1293 = vmatprep.subr.mxu0 %v1410_v1 }
 0x4e1   :  { %1294 = vmatpush3.msra.mxu0 %v1025_v32 }
 0x4e2   :  { %1295 = vmatprep.subr.mxu0 %v1410_v1 }
 0x4e3   :  { %1296 = vmatpush3.msra.mxu0 %v1024_v33 }
 0x4e4   :  { %1297 = vmatprep.subr.mxu0 %v1410_v1 }
 0x4e5   :  { %1298 = vmatpush3.msra.mxu0 %v1023_v34 }
 0x4e6   :  { %1299 = vmatprep.subr.mxu0 %v1410_v1 }
 0x4e7   :  { %1300 = vmatpush3.msra.mxu0 %v1022_v40 }
 0x4e8   :  { %1301 = vmatprep.subr.mxu0 %v1410_v1 }
 0x4e9   :  { %1302 = vmatpush3.msra.mxu0 %v1021_v41 }
 0x4ea   :  { %1303 = vmatprep.subr.mxu0 %v1410_v1 }
 0x4eb   :  { %1304 = vmatpush3.msra.mxu0 %v1020_v42 }
 0x4ec   :  { %1354 = vmatprep.subr.mxu0 %v1410_v1 }
 0x58c   :  { %v490_v12 = vpop.f32.mrf.mxu0 }
 0x58d   :  { %v494_v15 = vmul.f32 2.0, %v490_v12  ;;  %v1052_v12 = vld [vmem:[%s1896_s3 + $0x140] sm:$0xff] }
 0x58e   :  { %v1272_v16 = vpop.f32.mrf.mxu0 }
 0x58f   :  { %v499_v17 = vsub.f32 %v1037_v13, %v494_v15  ;;  %v1051_v13 = vld [vmem:[%s1896_s3 + $0x138] sm:$0xff]  ;;  %v1050_v15 = vld [vmem:[%s1896_s3 + $0x130] sm:$0xff]  ;;  %v1049_v16 = vld [vmem:[%s1896_s3 + $0x128] sm:$0xff] }
 0x591   :  { %500 = vmin.xlane.f32.xlu1 %v499_v17 }
 0x61a   :  { %v501_v18 = vpop.xlane.xlu1 %500 }
 0x61b   :  { %vm502_vm6 = vcmp.eq.f32.partialorder %v499_v17, %v501_v18  ;;  %v1048_v17 = vld [vmem:[%s1896_s3 + $0x120] sm:$0xff]  ;;  %v1047_v18 = vld [vmem:[%s1896_s3 + $0x118] sm:$0xff] }
 0x61c   :  { %v503_v19 = vsel %vm502_vm6, %v1557_v37, 128 }
 0x61d   :  { %v505_v20 = vshra.s32 %v503_v19, 16  ;;  %v504_v35 = vand.u32 65535, %v503_v19 }
 0x61f   :  { %v507_v21 = vcvt.s32.f32 %v505_v20  ;;  %v506_v38 = vcvt.s32.f32 %v504_v35  ;;  %v1065_v35 = vld [vmem:[%s1894_s1 + $0x88] sm:$0xff] }
 0x621   :  { %508 = vmin.xlane.f32.xlu0 %v507_v21 }
 0x6aa   :  { %v509_v36 = vpop.xlane.xlu0 %508 }
 0x6ab   :  { %vm510_vm7 = vcmp.eq.f32.partialorder %v507_v21, %v509_v36  ;;  %v515_v45 = vcvt.f32.s32 %v509_v36  ;;  %v1064_v36 = vld [vmem:[%s1894_s1 + $0x80] sm:$0xff] }
 0x6ac   :  { %v511_v39 = vsel %vm510_vm7, %v506_v38, inf }
 0x6ad   :  { %512 = vmin.xlane.f32.xlu1 %v511_v39  ;;  %v516_v47 = vshll.u32 %v515_v45, 16  ;;  %v1072_v45 = vld [vmem:[%s1894_s1 + $0xe0] sm:$0xff] }
 0x736   :  { %v513_v46 = vpop.xlane.xlu1 %512 }
 0x737   :  { %v514_v48 = vcvt.f32.s32 %v513_v46  ;;  %v1071_v46 = vld [vmem:[%s1894_s1 + $0xd8] sm:$0xff] }
 0x739   :  { %v517_v49 = vadd.s32 %v516_v47, %v514_v48  ;;  %v1070_v47 = vld [vmem:[%s1894_s1 + $0xd0] sm:$0xff]  ;;  %v1069_v48 = vld [vmem:[%s1894_s1 + $0xc8] sm:$0xff] }
 0x73b   :  { %vm518_vm8 = vcmp.eq.s32.totalorder %v1557_v37, %v517_v49  ;;  %v1068_v49 = vld [vmem:[%s1894_s1 + $0xc0] sm:$0xff] }
 0x73c   :  { %1306 = vmatmul.mubr.msk.f32.vlgmr.msra.gmra.mxu0 %vm518_vm8, %v1412_v6 }
 0x73d   :  { %1362 = vmatprep.mubr.msk.f32.mxu0 %vm1411_vm0, %v1410_v1  ;;  %1355 = vmatpush3.msra.mxu0 %v1067_v28 }
 0x73e   :  { %1356 = vmatprep.subr.mxu0 %v1410_v1 }
 0x73f   :  { %1357 = vmatpush3.msra.mxu0 %v1066_v29 }
 0x740   :  { %1358 = vmatprep.subr.mxu0 %v1410_v1 }
 0x741   :  { %1359 = vmatpush3.msra.mxu0 %v1065_v35 }
 0x742   :  { %1360 = vmatprep.subr.mxu0 %v1410_v1 }
 0x743   :  { %1361 = vmatpush3.msra.mxu0 %v1064_v36 }
 0x744   :  { %1365 = vmatprep.subr.mxu0 %v1410_v1 }
 0x7fc   :  { %v1742_v52 = vpop.f32.mrf.mxu0 }
 0x7fd   :  { %v1746_v53 = vsub.f32 %v1648_v10, %v1742_v52  ;;  %v1054_v10 = vld [vmem:[%s1896_s3 + $0x150] sm:$0xff]  ;;  %v597_v38 = vadd.f32 %v1742_v52, %v1644_v9 }
 0x7fe   :  { %v1307_v54 = vpop.f32.mrf.mxu0  ;;  %v1074_v9 = vld [vmem:[%s1894_s1 + $0xf0] sm:$0xff]  ;;  %s1413_s1 = smov [#allocation2]  }
 0x7ff   :  { %1317 = vmatmul.mubr.msk.f32.vlgmr.msra.gmra.mxu1 %vm218_vm2, %v1746_v53  ;;  %v592_v23 = vmul.f32 %v1746_v53, %v1746_v53 }
 0x800   :  { %1351 = vmatprep.mubr.msk.f32.mxu1 %vm1411_vm0, %v1410_v1  ;;  %1320 = vmatpush3.msra.mxu1 %v1059_v3 }
 0x801   :  { %1321 = vmatprep.subr.mxu1 %v1410_v1  ;;  %v593_v24 = vsel %vm218_vm2, %v592_v23, 0.0 }
 0x802   :  { %1322 = vmatpush3.msra.mxu1 %v1058_v4 }
 0x803   :  { %1323 = vmatprep.subr.mxu1 %v1410_v1 }
 0x804   :  { %1324 = vmatpush3.msra.mxu1 %v1057_v5 }
 0x805   :  { %1325 = vmatprep.subr.mxu1 %v1410_v1 }
 0x806   :  { %1326 = vmatpush3.msra.mxu1 %v1056_v7 }
 0x807   :  { %1327 = vmatprep.subr.mxu1 %v1410_v1 }
 0x808   :  { %1328 = vmatpush3.msra.mxu1 %v1055_v8 }
 0x809   :  { %1329 = vmatprep.subr.mxu1 %v1410_v1 }
 0x80a   :  { %1330 = vmatpush3.msra.mxu1 %v1054_v10 }
 0x80b   :  { %1331 = vmatprep.subr.mxu1 %v1410_v1 }
 0x80c   :  { %1332 = vmatpush3.msra.mxu1 %v1053_v11 }
 0x80d   :  { %1333 = vmatprep.subr.mxu1 %v1410_v1 }
 0x80e   :  { %1334 = vmatpush3.msra.mxu1 %v1052_v12 }
 0x80f   :  { %1335 = vmatprep.subr.mxu1 %v1410_v1 }
 0x810   :  { %1336 = vmatpush3.msra.mxu1 %v1051_v13 }
 0x811   :  { %1337 = vmatprep.subr.mxu1 %v1410_v1 }
 0x812   :  { %1338 = vmatpush3.msra.mxu1 %v1050_v15 }
 0x813   :  { %1339 = vmatprep.subr.mxu1 %v1410_v1 }
 0x814   :  { %1340 = vmatpush3.msra.mxu1 %v1049_v16 }
 0x815   :  { %1341 = vmatprep.subr.mxu1 %v1410_v1 }
 0x816   :  { %1342 = vmatpush3.msra.mxu1 %v1048_v17 }
 0x817   :  { %1343 = vmatprep.subr.mxu1 %v1410_v1 }
 0x818   :  { %1344 = vmatpush3.msra.mxu1 %v1047_v18 }
 0x819   :  { %1345 = vmatprep.subr.mxu1 %v1410_v1 }
 0x81a   :  { %1346 = vmatpush3.msra.mxu1 %v1046_v25 }
 0x81b   :  { %1347 = vmatprep.subr.mxu1 %v1410_v1 }
 0x81c   :  { %1348 = vmatpush3.msra.mxu1 %v1045_v26 }
 0x81d   :  { %1349 = vmatprep.subr.mxu1 %v1410_v1 }
 0x81e   :  { %1350 = vmatpush3.msra.mxu1 %v1044_v27 }
 0x8bf   :  { %v690_v55 = vpop.f32.mrf.mxu1 }
 0x8c0   :  { %v694_v57 = vmul.f32 2.0, %v690_v55  ;;  %v1078_v55 = vld [vmem:[%s1895_s2 + $0x3] ss:$0 sm:$0xff]  ;;  %s992_s2 = sshll.u32 %s1413_s1, 4  ;;  %s993_s2 = int_to_ptr.vmem [resolvable:$true] %s992_s2 }
 0x8c1   :  { %v1318_v58 = vpop.f32.mrf.mxu1  ;;  %s1388_s24 = scalar_lea.vmem %s993_s2, 16  ;;  %s1392_s25 = scalar_lea.vmem %s993_s2, 32 }
 0x8c2   :  { %v699_v59 = vsub.f32 %v1061_v56, %v694_v57  ;;  %p1389_p0 = scmp.ne.s32.totalorder %s993_s2, %s1388_s24  ;;  %p1393_p1 = scmp.lt.s32.totalorder %s993_s2, %s993_s2 }
 0x8c3   :  { %p1394_p2 = scmp.lt.s32.totalorder %s1392_s25, %s1388_s24 }
 0x8c4   :  { %700 = vmin.xlane.f32.xlu0 %v699_v59 }
 0x8c5   :  { %p1395_p3 = por %p1394_p2, %p1393_p1 }
 0x8c7   :  { %p1396_p4 = pnand %p1395_p3, %p1389_p0 }
 0x94d   :  { %v701_v60 = vpop.xlane.xlu0 %700 }
 0x94e   :  { %vm702_vm9 = vcmp.eq.f32.partialorder %v699_v59, %v701_v60 }
 0x94f   :  { %v703_v61 = vsel %vm702_vm9, %v1557_v37, 128 }
 0x950   :  { %v705_v62 = vshra.s32 %v703_v61, 16  ;;  %v704_v19 = vand.u32 65535, %v703_v61 }
 0x952   :  { %v707_v63 = vcvt.s32.f32 %v705_v62  ;;  %v706_v21 = vcvt.s32.f32 %v704_v19 }
 0x954   :  { %708 = vmin.xlane.f32.xlu1 %v707_v63 }
 0x958   :  { %394 = vadd.xlane.f32.xlu1 %v393_v2 }
 0x9dd   :  { %v709_v20 = vpop.xlane.xlu1 %708 }
 0x9de   :  { %vm710_vm10 = vcmp.eq.f32.partialorder %v707_v63, %v709_v20  ;;  %v715_v30 = vcvt.f32.s32 %v709_v20 }
 0x9df   :  { %v711_v22 = vsel %vm710_vm10, %v706_v21, inf }
 0x9e0   :  { %712 = vmin.xlane.f32.xlu0 %v711_v22  ;;  %v716_v32 = vshll.u32 %v715_v30, 16 }
 0x9e1   :  { %v395_v61 = vpop.xlane.xlu1 %394 }
 0x9e4   :  { %594 = vadd.xlane.f32.xlu0 %v593_v24 }
 0xa69   :  { %v713_v31 = vpop.xlane.xlu0 %712 }
 0xa6a   :  { %v714_v33 = vcvt.f32.s32 %v713_v31 }
 0xa6c   :  { %v717_v34 = vadd.s32 %v716_v32, %v714_v33 }
 0xa6d   :  { %v595_v62 = vpop.xlane.xlu0 %594 }
 0xa6e   :  { %vm718_vm11 = vcmp.eq.s32.totalorder %v1557_v37, %v717_v34  ;;  %v596_v0 = vadd.f32 %v595_v62, %v395_v61 }
 0xa6f   :  { %1352 = vmatmul.mubr.msk.f32.vlgmr.msra.gmra.mxu1 %vm718_vm11, %v1412_v6 }
 0xb2f   :  { %v787_v37 = vpop.f32.mrf.mxu1 }
 0xb30   :  { %v791_v6 = vsub.f32 %v1746_v53, %v787_v37  ;;  %v797_v39 = vadd.f32 %v787_v37, %v597_v38 }
 0xb31   :  { %v1353_v40 = vpop.f32.mrf.mxu1 }
 0xb32   :  { %v792_v41 = vmul.f32 %v791_v6, %v791_v6  ;;  %1363 = vmatmul.mubr.msk.f32.vlgmr.msra.gmra.mxu0 %vm218_vm2, %v797_v39 }
 0xb33   :  { %1381 = vmatprep.mubr.msk.f32.mxu0 %vm1411_vm0, %v1410_v1  ;;  %1366 = vmatpush3.msra.mxu0 %v1075_v43 }
 0xb34   :  { %v793_v42 = vsel %vm218_vm2, %v792_v41, 0.0  ;;  %1367 = vmatprep.subr.mxu0 %v1410_v1 }
 0xb35   :  { %794 = vadd.xlane.f32.xlu1 %v793_v42  ;;  %1368 = vmatpush3.msra.mxu0 %v1074_v9 }
 0xb36   :  { %1369 = vmatprep.subr.mxu0 %v1410_v1 }
 0xb37   :  { %1370 = vmatpush3.msra.mxu0 %v1073_v44 }
 0xb38   :  { %1371 = vmatprep.subr.mxu0 %v1410_v1 }
 0xb39   :  { %1372 = vmatpush3.msra.mxu0 %v1072_v45 }
 0xb3a   :  { %1373 = vmatprep.subr.mxu0 %v1410_v1 }
 0xb3b   :  { %1374 = vmatpush3.msra.mxu0 %v1071_v46 }
 0xb3c   :  { %1375 = vmatprep.subr.mxu0 %v1410_v1 }
 0xb3d   :  { %1376 = vmatpush3.msra.mxu0 %v1070_v47 }
 0xb3e   :  { %1377 = vmatprep.subr.mxu0 %v1410_v1 }
 0xb3f   :  { %1378 = vmatpush3.msra.mxu0 %v1069_v48 }
 0xb40   :  { %1379 = vmatprep.subr.mxu0 %v1410_v1 }
 0xb41   :  { %1380 = vmatpush3.msra.mxu0 %v1068_v49 }
 0xbbe   :  { %v795_v63 = vpop.xlane.xlu1 %794 }
 0xbbf   :  { %v796_v2 = vadd.f32 %v795_v63, %v596_v0 }
 0xbc1   :  { %v974_v3 = vmul.f32 1.25, %v796_v2 }
 0xbf2   :  { %v886_v51 = vpop.f32.mrf.mxu0 }
 0xbf3   :  { %v887_v52 = vadd.f32 %v1076_v50, %v886_v51 }
 0xbf4   :  { %v1364_v53 = vpop.f32.mrf.mxu0 }
 0xbf5   :  { %v890_v54 = vmax.f32 %v887_v52, 0.0 }
 0xbf7   :  { %1382 = vmatmul.mubr.msk.f32.vlgmr.msra.gmra.mxu0 %vm44_vm1, %v890_v54 }
 0xcb7   :  { %v965_v1 = vpop.f32.mrf.mxu0 }
 0xcb8   :  { %v966_v56 = vadd.f32 %v1078_v55, %v965_v1 }
 0xcb9   :  { %v1383_v57 = vpop.f32.mrf.mxu0 }
 0xcba   :  { %v969_v58 = vsub.f32 %v966_v56, %v1503_v14 }
 0xcbc   :  { %v970_v59 = vmul.f32 %v969_v58, %v969_v58 }
 0xcbe   :  { %v971_v60 = vsel %vm44_vm1, %v970_v59, 0.0 }
 0xcbf   :  { %972 = vadd.xlane.f32.xlu0 %v971_v60 }
 0xd48   :  { %v973_v4 = vpop.xlane.xlu0 %972 }
 0xd49   :  { %v975_v5 = vadd.f32 %v974_v3, %v973_v4 }
 0xd4b   :  { %v976_v7 = vrot.slane %v975_v5, 4 }
 0xd4d   :  { %v977_v8 = vadd.f32 %v976_v7, %v975_v5 }
 0xd4f   :  { %v978_v10 = vrot.slane %v977_v8, 2 }
 0xd51   :  { %v979_v11 = vadd.f32 %v978_v10, %v977_v8 }
 0xd53   :  { %v980_v12 = vrot.slane %v979_v11, 1 }
 0xd55   :  { %v981_v14 = vadd.f32 %v980_v12, %v979_v11 }
 0xd57   :  { %v983_v13 = vmul.f32 0.125, %v981_v14 }
 0xd59   :  { %985 = vst.msk [vmem:[#allocation2] sm:$0x1] %vm984_vm12, %v983_v13 }
 0xd5a   :  { %1399 = shalt.err (!%p1396_p4)
}
 0xd5b   :  { %995 = dma.vmem_to_hbm [thread:$0]  %s993_s2, 16, %s1898_s5, [#allocation3]  }
 0xd5c   :  { %1408 = dma.done.wait [#allocation3], 16  }
 0xd5d   :  { %1409 = vsyncadd [#allocation3], 4294967280 }
 0xd5e   :  { %999 = vsyncpa [#allocation3], 1 }

</bundles_post_ra>
